<compile_context>
chip_gen: v5e
topology: v5e:2x2
jax: 0.10.0
libtpu: 0.0.40
codegen_flags: <defaults>
</compile_context>

<pallas_src>
import functools
import math

import jax
import jax.numpy as jnp
from jax import lax
from jax.experimental import pallas as pl
from jax.experimental.pallas import tpu as pltpu


def _mha_kernel(*refs, heads, head_dim, alpha, has_edge):
    if has_edge:
        x_ref, edge_ref, wqk_ref, wvo_ref, out_ref = refs
    else:
        x_ref, wqk_ref, wvo_ref, out_ref = refs
        edge_ref = None

    H = heads * head_dim
    x = x_ref[...]            # (TB, N, H)
    w_qk = wqk_ref[...]       # (H, 2H)       -- resident across grid steps
    w_vo = wvo_ref[...]       # (H, heads*H)  -- resident across grid steps
    e = edge_ref[...] if has_edge else None   # (TB, N, heads*N)

    n = x.shape[1]

    # One fused MXU matmul each; M dimension = TB*N rows.
    def proj(w):
        return lax.dot_general(x, w,
                               dimension_numbers=(((2,), (0,)), ((), ())),
                               preferred_element_type=jnp.float32)

    qk = proj(w_qk)           # (TB, N, 2H)   Q | K for all heads
    vo = proj(w_vo)           # (TB, N, heads*H)  == x @ (Wv_h @ Wo_h) per head

    acc = jnp.zeros(x.shape, dtype=jnp.float32)

    # heads is a small Python int -> fully unrolled, static lane slices.
    for h in range(heads):
        q = qk[:, :, h * head_dim:(h + 1) * head_dim]          # (TB, N, hd)
        k = qk[:, :, H + h * head_dim:H + (h + 1) * head_dim]  # (TB, N, hd)

        # S = edge + alpha * Q @ K^T  (baddbmm, beta=1); contraction on the
        # head dim -- no explicit transpose of K.
        s = lax.dot_general(q, k,
                            dimension_numbers=(((2,), (2,)), ((0,), (0,))),
                            preferred_element_type=jnp.float32)  # (TB, N, N)
        s = alpha * s
        if has_edge:
            s = s + e[:, :, h * n:(h + 1) * n]

        # Numerically stable softmax; exact reciprocal holds the 1e-4 tolerance.
        s = s - jnp.max(s, axis=-1, keepdims=True)
        p = jnp.exp(s)
        p = p * pl.reciprocal(jnp.sum(p, axis=-1, keepdims=True), approx=False)

        # softmax(S_h) @ (x @ Wv_h @ Wo_h)  ==  attn_h @ nn_O[h*hd:(h+1)*hd, :]
        acc = acc + lax.dot_general(p, vo[:, :, h * H:(h + 1) * H],
                                    dimension_numbers=(((2,), (1,)), ((0,), (0,))),
                                    preferred_element_type=jnp.float32)

    out_ref[...] = acc.astype(out_ref.dtype)   # single store per grid step


def _choose_tile_b(B, N, H, heads, vmem_budget_bytes=40 << 20):
    """Pick how many batch elements to process per grid step."""
    pad_l = lambda d: -(-d // 128) * 128          # lane padding
    n_pad = -(-N // 8) * 8                        # sublane padding
    # double-buffered IO blocks (x + packed edge + out), f32, padded
    io = n_pad * (pad_l(H) + pad_l(heads * N) + pad_l(H))
    # live intermediates per batch element (qk, vo, acc, per-head s & p)
    interm = n_pad * (pad_l(2 * H) + pad_l(heads * H) + pad_l(H) + 2 * pad_l(N))
    per_b = 4 * (2 * io + interm)
    tb = max(1, min(B, vmem_budget_bytes // max(per_b, 1)))
    if B >= 4:
        # keep >= 2 grid steps marked "parallel" so both v7x TensorCores get work
        tb = min(tb, pl.cdiv(B, 2))
    return int(tb), per_b


def multi_head_attention(x, edge, nn_Q, nn_K, nn_V, nn_O, heads):
    """x: (B, N, H); edge: (heads, B, N, N) or None; params as in the module."""
    B, N, H = x.shape
    hd = H // heads
    alpha = 1.0 / math.sqrt(hd)

    # Pack per-head Q/K projections: column block [h*hd:(h+1)*hd] of the Q
    # (resp. K) section equals nn_Q[h] (resp. nn_K[h]).
    wq = jnp.transpose(nn_Q, (1, 0, 2)).reshape(H, H)
    wk = jnp.transpose(nn_K, (1, 0, 2)).reshape(H, H)
    w_qk = jnp.concatenate([wq, wk], axis=1)                       # (H, 2H)

    # Fold V and O wrapper-side:  W_vo[:, h*H:(h+1)*H] = nn_V[h] @ nn_O[h*hd:(h+1)*hd, :]
    w_vo = jnp.concatenate(
        [nn_V[h] @ nn_O[h * hd:(h + 1) * hd, :] for h in range(heads)],
        axis=1)                                                    # (H, heads*H)

    tb, per_b_bytes = _choose_tile_b(B, N, H, heads)
    grid = (pl.cdiv(B, tb),)
    vmem_limit = int(min(64 << 20, max(4 << 20, 4 * per_b_bytes * tb)))

    has_edge = edge is not None
    kernel = functools.partial(_mha_kernel, heads=heads, head_dim=hd,
                               alpha=alpha, has_edge=has_edge)

    in_specs = [pl.BlockSpec((tb, N, H), lambda i: (i, 0, 0))]      # x tile
    args = [x]
    if has_edge:
        # (heads, B, N, N) -> (B, N, heads*N): contiguous per-batch slab,
        # one DMA per step, 4x instead of 16x lane padding.
        edge_p = jnp.transpose(edge, (1, 2, 0, 3)).reshape(B, N, heads * N)
        in_specs.append(pl.BlockSpec((tb, N, heads * N), lambda i: (i, 0, 0)))
        args.append(edge_p)
    in_specs += [
        pl.BlockSpec((H, 2 * H), lambda i: (0, 0)),                 # w_qk resident
        pl.BlockSpec((H, heads * H), lambda i: (0, 0)),             # w_vo resident
    ]
    args += [w_qk, w_vo]

    return pl.pallas_call(
        kernel,
        out_shape=jax.ShapeDtypeStruct((B, N, H), jnp.float32),
        grid_spec=pltpu.PrefetchScalarGridSpec(
            num_scalar_prefetch=0,
            grid=grid,
            in_specs=in_specs,
            out_specs=pl.BlockSpec((tb, N, H), lambda i: (i, 0, 0)),
        ),
        compiler_params=pltpu.CompilerParams(
            dimension_semantics=("parallel",),
            vmem_limit_bytes=vmem_limit),
    )(*args)


def _reference(x, edge, nn_Q, nn_K, nn_V, nn_O, heads):
    """Pure-JAX port of the PyTorch forward, for verification."""
    B, N, H = x.shape
    hd = H // heads
    alpha = 1.0 / math.sqrt(hd)
    xf = x.reshape(-1, H)                                   # (B*N, H)
    Q = jnp.einsum('nh,ahd->and', xf, nn_Q).reshape(heads, B, N, hd)
    K = jnp.einsum('nh,ahd->and', xf, nn_K).reshape(heads, B, N, hd)
    V = jnp.einsum('nh,ahd->and', xf, nn_V).reshape(heads, B, N, hd)
    bias = edge if edge is not None else jnp.zeros((heads, B, N, N), x.dtype)
    S = bias + alpha * jnp.einsum('abnd,abmd->abnm', Q, K)
    S = jax.nn.softmax(S, axis=-1)
    o = jnp.einsum('abnm,abmd->abnd', S, V)                 # (heads, B, N, hd)
    o = jnp.transpose(o, (1, 2, 0, 3)).reshape(B, N, H)
    return o @ nn_O


if __name__ == "__main__":
    heads = 4
    hidden_dim = 32
    head_dim = hidden_dim // heads
    batch = 2
    item_num = 8

    key = jax.random.PRNGKey(0)
    k_x, k_e, k_q, k_k, k_v, k_o = jax.random.split(key, 6)

    # Deterministic parameter init mirroring the module's uniform(-stdv, stdv).
    stdv_qkv = 1.0 / math.sqrt(head_dim)
    stdv_o = 1.0 / math.sqrt(hidden_dim)
    nn_Q = jax.random.uniform(k_q, (heads, hidden_dim, head_dim),
                              jnp.float32, -stdv_qkv, stdv_qkv)
    nn_K = jax.random.uniform(k_k, (heads, hidden_dim, head_dim),
                              jnp.float32, -stdv_qkv, stdv_qkv)
    nn_V = jax.random.uniform(k_v, (heads, hidden_dim, head_dim),
                              jnp.float32, -stdv_qkv, stdv_qkv)
    nn_O = jax.random.uniform(k_o, (hidden_dim, hidden_dim),
                              jnp.float32, -stdv_o, stdv_o)

    x = jax.random.normal(k_x, (batch, item_num, hidden_dim), jnp.float32)
    edge = jax.random.normal(k_e, (heads, batch, item_num, item_num),
                             jnp.float32)

    # edge provided (baddbmm beta=1 branch)
    out = multi_head_attention(x, edge, nn_Q, nn_K, nn_V, nn_O, heads)
    out = jax.block_until_ready(out)
    ref = _reference(x, edge, nn_Q, nn_K, nn_V, nn_O, heads)
    assert out.shape == (batch, item_num, hidden_dim)
    assert jnp.allclose(out, ref, atol=1e-4, rtol=1e-4), "mismatch vs reference"

    # edge=None (zero-bias) branch: dedicated kernel variant, no zeros streamed.
    out_ne = multi_head_attention(x, None, nn_Q, nn_K, nn_V, nn_O, heads)
    out_ne = jax.block_until_ready(out_ne)
    ref_ne = _reference(x, None, nn_Q, nn_K, nn_V, nn_O, heads)
    assert jnp.allclose(out_ne, ref_ne, atol=1e-4, rtol=1e-4), \
        "mismatch vs reference (edge=None)"

    print("KERNEL_OK")
</pallas_src>

<mosaic_0001>
module attributes {stable_mosaic.version = 11 : i64} {
  func.func @_mha_kernel(%arg0: i32, %arg1: memref<2x8x32xf32, #tpu.memory_space<vmem>>, %arg2: memref<2x8x32xf32, #tpu.memory_space<vmem>>, %arg3: memref<32x64xf32, #tpu.memory_space<vmem>>, %arg4: memref<32x128xf32, #tpu.memory_space<vmem>>, %arg5: memref<2x8x32xf32, #tpu.memory_space<vmem>>) attributes {dimension_semantics = [#tpu.dimension_semantics<parallel>], iteration_bounds = array<i64: 1>, scalar_prefetch = 0 : i64, scratch_operands = 0 : i64, tpu.core_type = #tpu.core_type<tc>, window_params = [{transform_indices = @transform_0, window_bounds = array<i64: 2, 8, 32>}, {transform_indices = @transform_1, window_bounds = array<i64: 2, 8, 32>}, {pipeline_mode = #tpu.pipeline_mode<synchronous>, transform_indices = @transform_2, window_bounds = array<i64: 32, 64>}, {pipeline_mode = #tpu.pipeline_mode<synchronous>, transform_indices = @transform_3, window_bounds = array<i64: 32, 128>}, {transform_indices = @transform_4, window_bounds = array<i64: 2, 8, 32>}]} {
    %c0 = arith.constant 0 : index
    %c0_0 = arith.constant 0 : index
    %c0_1 = arith.constant 0 : index
    %0 = vector.load %arg1[%c0, %c0_0, %c0_1] : memref<2x8x32xf32, #tpu.memory_space<vmem>>, vector<2x8x32xf32>
    %c0_2 = arith.constant 0 : index
    %c0_3 = arith.constant 0 : index
    %1 = vector.load %arg3[%c0_2, %c0_3] : memref<32x64xf32, #tpu.memory_space<vmem>>, vector<32x64xf32>
    %c0_4 = arith.constant 0 : index
    %c0_5 = arith.constant 0 : index
    %2 = vector.load %arg4[%c0_4, %c0_5] : memref<32x128xf32, #tpu.memory_space<vmem>>, vector<32x128xf32>
    %c0_6 = arith.constant 0 : index
    %c0_7 = arith.constant 0 : index
    %c0_8 = arith.constant 0 : index
    %3 = vector.load %arg2[%c0_6, %c0_7, %c0_8] : memref<2x8x32xf32, #tpu.memory_space<vmem>>, vector<2x8x32xf32>
    %cst = arith.constant dense<0.000000e+00> : vector<2x8x64xf32>
    %4 = tpu.matmul %0, %1, %cst {dimension_numbers = #tpu.dot_dimension_numbers<[2], [0], [0, 1], [1], [0, 0, 0, 1, 1, 1], [], []>} : vector<2x8x32xf32>, vector<32x64xf32>, vector<2x8x64xf32> -> vector<2x8x64xf32>
    %cst_9 = arith.constant dense<0.000000e+00> : vector<2x8x128xf32>
    %5 = tpu.matmul %0, %2, %cst_9 {dimension_numbers = #tpu.dot_dimension_numbers<[2], [0], [0, 1], [1], [0, 0, 0, 1, 1, 1], [], []>} : vector<2x8x32xf32>, vector<32x128xf32>, vector<2x8x128xf32> -> vector<2x8x128xf32>
    %cst_10 = arith.constant 0.000000e+00 : f32
    %6 = vector.broadcast %cst_10 : f32 to vector<2x8x32xf32>
    %7 = vector.extract_strided_slice %4 {offsets = [0, 0, 0], sizes = [2, 8, 8], strides = [1, 1, 1]} : vector<2x8x64xf32> to vector<2x8x8xf32>
    %8 = vector.extract_strided_slice %4 {offsets = [0, 0, 32], sizes = [2, 8, 8], strides = [1, 1, 1]} : vector<2x8x64xf32> to vector<2x8x8xf32>
    %cst_11 = arith.constant dense<0.000000e+00> : vector<2x8x8xf32>
    %9 = tpu.matmul %7, %8, %cst_11 {dimension_numbers = #tpu.dot_dimension_numbers<[2], [2], [1], [1], [0, 0, 0, 1, 1, 1], [0], [0]>} : vector<2x8x8xf32>, vector<2x8x8xf32>, vector<2x8x8xf32> -> vector<2x8x8xf32>
    %cst_12 = arith.constant 0.353553385 : f32
    %10 = vector.broadcast %cst_12 : f32 to vector<2x8x8xf32>
    %11 = arith.mulf %10, %9 : vector<2x8x8xf32>
    %12 = vector.extract_strided_slice %3 {offsets = [0, 0, 0], sizes = [2, 8, 8], strides = [1, 1, 1]} : vector<2x8x32xf32> to vector<2x8x8xf32>
    %13 = arith.addf %11, %12 : vector<2x8x8xf32>
    %cst_13 = arith.constant dense<0xFF800000> : vector<2x8xf32>
    %14 = vector.multi_reduction <maximumf>, %13, %cst_13 [2] : vector<2x8x8xf32> to vector<2x8xf32>
    %15 = vector.shape_cast %14 : vector<2x8xf32> to vector<2x8x1xf32>
    %16 = vector.broadcast %15 : vector<2x8x1xf32> to vector<2x8x8xf32>
    %17 = arith.subf %13, %16 : vector<2x8x8xf32>
    %18 = math.exp %17 : vector<2x8x8xf32>
    %cst_14 = arith.constant dense<0.000000e+00> : vector<2x8xf32>
    %19 = vector.multi_reduction <add>, %18, %cst_14 [2] : vector<2x8x8xf32> to vector<2x8xf32>
    %20 = vector.shape_cast %19 : vector<2x8xf32> to vector<2x8x1xf32>
    %21 = tpu.reciprocal %20 : vector<2x8x1xf32> -> vector<2x8x1xf32>
    %22 = vector.broadcast %21 : vector<2x8x1xf32> to vector<2x8x8xf32>
    %23 = arith.mulf %18, %22 : vector<2x8x8xf32>
    %24 = vector.extract_strided_slice %5 {offsets = [0, 0, 0], sizes = [2, 8, 32], strides = [1, 1, 1]} : vector<2x8x128xf32> to vector<2x8x32xf32>
    %cst_15 = arith.constant dense<0.000000e+00> : vector<2x8x32xf32>
    %25 = tpu.matmul %23, %24, %cst_15 {dimension_numbers = #tpu.dot_dimension_numbers<[2], [1], [1], [2], [0, 0, 0, 1, 1, 2], [0], [0]>} : vector<2x8x8xf32>, vector<2x8x32xf32>, vector<2x8x32xf32> -> vector<2x8x32xf32>
    %26 = arith.addf %6, %25 : vector<2x8x32xf32>
    %27 = vector.extract_strided_slice %4 {offsets = [0, 0, 8], sizes = [2, 8, 8], strides = [1, 1, 1]} : vector<2x8x64xf32> to vector<2x8x8xf32>
    %28 = vector.extract_strided_slice %4 {offsets = [0, 0, 40], sizes = [2, 8, 8], strides = [1, 1, 1]} : vector<2x8x64xf32> to vector<2x8x8xf32>
    %cst_16 = arith.constant dense<0.000000e+00> : vector<2x8x8xf32>
    %29 = tpu.matmul %27, %28, %cst_16 {dimension_numbers = #tpu.dot_dimension_numbers<[2], [2], [1], [1], [0, 0, 0, 1, 1, 1], [0], [0]>} : vector<2x8x8xf32>, vector<2x8x8xf32>, vector<2x8x8xf32> -> vector<2x8x8xf32>
    %cst_17 = arith.constant 0.353553385 : f32
    %30 = vector.broadcast %cst_17 : f32 to vector<2x8x8xf32>
    %31 = arith.mulf %30, %29 : vector<2x8x8xf32>
    %32 = vector.extract_strided_slice %3 {offsets = [0, 0, 8], sizes = [2, 8, 8], strides = [1, 1, 1]} : vector<2x8x32xf32> to vector<2x8x8xf32>
    %33 = arith.addf %31, %32 : vector<2x8x8xf32>
    %cst_18 = arith.constant dense<0xFF800000> : vector<2x8xf32>
    %34 = vector.multi_reduction <maximumf>, %33, %cst_18 [2] : vector<2x8x8xf32> to vector<2x8xf32>
    %35 = vector.shape_cast %34 : vector<2x8xf32> to vector<2x8x1xf32>
    %36 = vector.broadcast %35 : vector<2x8x1xf32> to vector<2x8x8xf32>
    %37 = arith.subf %33, %36 : vector<2x8x8xf32>
    %38 = math.exp %37 : vector<2x8x8xf32>
    %cst_19 = arith.constant dense<0.000000e+00> : vector<2x8xf32>
    %39 = vector.multi_reduction <add>, %38, %cst_19 [2] : vector<2x8x8xf32> to vector<2x8xf32>
    %40 = vector.shape_cast %39 : vector<2x8xf32> to vector<2x8x1xf32>
    %41 = tpu.reciprocal %40 : vector<2x8x1xf32> -> vector<2x8x1xf32>
    %42 = vector.broadcast %41 : vector<2x8x1xf32> to vector<2x8x8xf32>
    %43 = arith.mulf %38, %42 : vector<2x8x8xf32>
    %44 = vector.extract_strided_slice %5 {offsets = [0, 0, 32], sizes = [2, 8, 32], strides = [1, 1, 1]} : vector<2x8x128xf32> to vector<2x8x32xf32>
    %cst_20 = arith.constant dense<0.000000e+00> : vector<2x8x32xf32>
    %45 = tpu.matmul %43, %44, %cst_20 {dimension_numbers = #tpu.dot_dimension_numbers<[2], [1], [1], [2], [0, 0, 0, 1, 1, 2], [0], [0]>} : vector<2x8x8xf32>, vector<2x8x32xf32>, vector<2x8x32xf32> -> vector<2x8x32xf32>
    %46 = arith.addf %26, %45 : vector<2x8x32xf32>
    %47 = vector.extract_strided_slice %4 {offsets = [0, 0, 16], sizes = [2, 8, 8], strides = [1, 1, 1]} : vector<2x8x64xf32> to vector<2x8x8xf32>
    %48 = vector.extract_strided_slice %4 {offsets = [0, 0, 48], sizes = [2, 8, 8], strides = [1, 1, 1]} : vector<2x8x64xf32> to vector<2x8x8xf32>
    %cst_21 = arith.constant dense<0.000000e+00> : vector<2x8x8xf32>
    %49 = tpu.matmul %47, %48, %cst_21 {dimension_numbers = #tpu.dot_dimension_numbers<[2], [2], [1], [1], [0, 0, 0, 1, 1, 1], [0], [0]>} : vector<2x8x8xf32>, vector<2x8x8xf32>, vector<2x8x8xf32> -> vector<2x8x8xf32>
    %cst_22 = arith.constant 0.353553385 : f32
    %50 = vector.broadcast %cst_22 : f32 to vector<2x8x8xf32>
    %51 = arith.mulf %50, %49 : vector<2x8x8xf32>
    %52 = vector.extract_strided_slice %3 {offsets = [0, 0, 16], sizes = [2, 8, 8], strides = [1, 1, 1]} : vector<2x8x32xf32> to vector<2x8x8xf32>
    %53 = arith.addf %51, %52 : vector<2x8x8xf32>
    %cst_23 = arith.constant dense<0xFF800000> : vector<2x8xf32>
    %54 = vector.multi_reduction <maximumf>, %53, %cst_23 [2] : vector<2x8x8xf32> to vector<2x8xf32>
    %55 = vector.shape_cast %54 : vector<2x8xf32> to vector<2x8x1xf32>
    %56 = vector.broadcast %55 : vector<2x8x1xf32> to vector<2x8x8xf32>
    %57 = arith.subf %53, %56 : vector<2x8x8xf32>
    %58 = math.exp %57 : vector<2x8x8xf32>
    %cst_24 = arith.constant dense<0.000000e+00> : vector<2x8xf32>
    %59 = vector.multi_reduction <add>, %58, %cst_24 [2] : vector<2x8x8xf32> to vector<2x8xf32>
    %60 = vector.shape_cast %59 : vector<2x8xf32> to vector<2x8x1xf32>
    %61 = tpu.reciprocal %60 : vector<2x8x1xf32> -> vector<2x8x1xf32>
    %62 = vector.broadcast %61 : vector<2x8x1xf32> to vector<2x8x8xf32>
    %63 = arith.mulf %58, %62 : vector<2x8x8xf32>
    %64 = vector.extract_strided_slice %5 {offsets = [0, 0, 64], sizes = [2, 8, 32], strides = [1, 1, 1]} : vector<2x8x128xf32> to vector<2x8x32xf32>
    %cst_25 = arith.constant dense<0.000000e+00> : vector<2x8x32xf32>
    %65 = tpu.matmul %63, %64, %cst_25 {dimension_numbers = #tpu.dot_dimension_numbers<[2], [1], [1], [2], [0, 0, 0, 1, 1, 2], [0], [0]>} : vector<2x8x8xf32>, vector<2x8x32xf32>, vector<2x8x32xf32> -> vector<2x8x32xf32>
    %66 = arith.addf %46, %65 : vector<2x8x32xf32>
    %67 = vector.extract_strided_slice %4 {offsets = [0, 0, 24], sizes = [2, 8, 8], strides = [1, 1, 1]} : vector<2x8x64xf32> to vector<2x8x8xf32>
    %68 = vector.extract_strided_slice %4 {offsets = [0, 0, 56], sizes = [2, 8, 8], strides = [1, 1, 1]} : vector<2x8x64xf32> to vector<2x8x8xf32>
    %cst_26 = arith.constant dense<0.000000e+00> : vector<2x8x8xf32>
    %69 = tpu.matmul %67, %68, %cst_26 {dimension_numbers = #tpu.dot_dimension_numbers<[2], [2], [1], [1], [0, 0, 0, 1, 1, 1], [0], [0]>} : vector<2x8x8xf32>, vector<2x8x8xf32>, vector<2x8x8xf32> -> vector<2x8x8xf32>
    %cst_27 = arith.constant 0.353553385 : f32
    %70 = vector.broadcast %cst_27 : f32 to vector<2x8x8xf32>
    %71 = arith.mulf %70, %69 : vector<2x8x8xf32>
    %72 = vector.extract_strided_slice %3 {offsets = [0, 0, 24], sizes = [2, 8, 8], strides = [1, 1, 1]} : vector<2x8x32xf32> to vector<2x8x8xf32>
    %73 = arith.addf %71, %72 : vector<2x8x8xf32>
    %cst_28 = arith.constant dense<0xFF800000> : vector<2x8xf32>
    %74 = vector.multi_reduction <maximumf>, %73, %cst_28 [2] : vector<2x8x8xf32> to vector<2x8xf32>
    %75 = vector.shape_cast %74 : vector<2x8xf32> to vector<2x8x1xf32>
    %76 = vector.broadcast %75 : vector<2x8x1xf32> to vector<2x8x8xf32>
    %77 = arith.subf %73, %76 : vector<2x8x8xf32>
    %78 = math.exp %77 : vector<2x8x8xf32>
    %cst_29 = arith.constant dense<0.000000e+00> : vector<2x8xf32>
    %79 = vector.multi_reduction <add>, %78, %cst_29 [2] : vector<2x8x8xf32> to vector<2x8xf32>
    %80 = vector.shape_cast %79 : vector<2x8xf32> to vector<2x8x1xf32>
    %81 = tpu.reciprocal %80 : vector<2x8x1xf32> -> vector<2x8x1xf32>
    %82 = vector.broadcast %81 : vector<2x8x1xf32> to vector<2x8x8xf32>
    %83 = arith.mulf %78, %82 : vector<2x8x8xf32>
    %84 = vector.extract_strided_slice %5 {offsets = [0, 0, 96], sizes = [2, 8, 32], strides = [1, 1, 1]} : vector<2x8x128xf32> to vector<2x8x32xf32>
    %cst_30 = arith.constant dense<0.000000e+00> : vector<2x8x32xf32>
    %85 = tpu.matmul %83, %84, %cst_30 {dimension_numbers = #tpu.dot_dimension_numbers<[2], [1], [1], [2], [0, 0, 0, 1, 1, 2], [0], [0]>} : vector<2x8x8xf32>, vector<2x8x32xf32>, vector<2x8x32xf32> -> vector<2x8x32xf32>
    %86 = arith.addf %66, %85 : vector<2x8x32xf32>
    %c0_31 = arith.constant 0 : index
    %c0_32 = arith.constant 0 : index
    %c0_33 = arith.constant 0 : index
    %87 = vector.load %arg5[%c0_31, %c0_32, %c0_33] : memref<2x8x32xf32, #tpu.memory_space<vmem>>, vector<2x8x32xf32>
    tpu.vector_store %arg5[%c0_31, %c0_32, %c0_33], %86 {strides = array<i32>} : memref<2x8x32xf32, #tpu.memory_space<vmem>>, vector<2x8x32xf32>,
    return
  }
  func.func @transform_0(%arg0: i32) -> (i32, i32, i32) {
    %c0_i32 = arith.constant 0 : i32
    %c0_i32_0 = arith.constant 0 : i32
    %c0_i32_1 = arith.constant 0 : i32
    return %arg0, %c0_i32, %c0_i32_0 : i32, i32, i32
  }
  func.func @transform_1(%arg0: i32) -> (i32, i32, i32) {
    %c0_i32 = arith.constant 0 : i32
    %c0_i32_0 = arith.constant 0 : i32
    %c0_i32_1 = arith.constant 0 : i32
    return %arg0, %c0_i32, %c0_i32_0 : i32, i32, i32
  }
  func.func @transform_2(%arg0: i32) -> (i32, i32) {
    %c0_i32 = arith.constant 0 : i32
    %c0_i32_0 = arith.constant 0 : i32
    %c0_i32_1 = arith.constant 0 : i32
    return %c0_i32, %c0_i32_0 : i32, i32
  }
  func.func @transform_3(%arg0: i32) -> (i32, i32) {
    %c0_i32 = arith.constant 0 : i32
    %c0_i32_0 = arith.constant 0 : i32
    %c0_i32_1 = arith.constant 0 : i32
    return %c0_i32, %c0_i32_0 : i32, i32
  }
  func.func @transform_4(%arg0: i32) -> (i32, i32, i32) {
    %c0_i32 = arith.constant 0 : i32
    %c0_i32_0 = arith.constant 0 : i32
    %c0_i32_1 = arith.constant 0 : i32
    return %arg0, %c0_i32, %c0_i32_0 : i32, i32, i32
  }
}

</mosaic_0001>

<bundles_post_ra>
// kernel: tpu_custom_call.1
= control target key start
LH: loop header
LB: loop body
LE: loop exit
PB: predicated region body
PF: predicated region fallthrough
CT: control target
= control target key end

     0   :  { %9 = vsyncpa [#allocation3], 0  ;;  %s1250_s0 = inlined_call_operand.hbm [shape: f32[2,8,32], index: 0, kind: input, shape index: {}]   ;;  %s1251_s1 = inlined_call_operand.hbm [shape: f32[2,8,32], index: 1, kind: input, shape index: {}]   ;;  %s1252_s2 = inlined_call_operand.hbm [shape: f32[32,64], index: 2, kind: input, shape index: {}]   ;;  %s1253_s3 = inlined_call_operand.hbm [shape: f32[32,128], index: 3, kind: input, shape index: {}]   ;;  %s1254_s4 = inlined_call_operand.hbm [shape: f32[2,8,32], index: 4, kind: output, shape index: {}]  }
   0x1   :  { %10 = vsyncpa [#allocation6], 0 }
   0x2   :  { %11 = vsyncpa [#allocation9], 0 }
   0x3   :  { %12 = vsyncpa [#allocation4], 0  ;;  %s30_s17 = sshll.u32 %s1251_s1, 4  ;;  %s1047_s18 = smov [#allocation5]   ;;  %s31_s17 = int_to_ptr.hbm [resolvable:$true] %s30_s17 }
   0x4   :  { %s32_s19 = sshll.u32 %s1047_s18, 4  ;;  %s17_s22 = sshll.u32 %s1250_s0, 4  ;;  %s33_s19 = int_to_ptr.vmem [resolvable:$true] %s32_s19  ;;  %s18_s22 = int_to_ptr.hbm [resolvable:$true] %s17_s22 }
   0x5   :  { %s1048_s23 = smov 128   ;;  %s1049_s24 = smov 8  }
   0x6   :  { %38 = dma.hbm_to_vmem [thread:$0]  %s31_s17, 256, %s33_s19, [#allocation6], %s1048_s23, %s1048_s23, %s1049_s24  }
   0x7   :  { %s1050_s25 = smov [#allocation2]   ;;  %s43_s1 = sshll.u32 %s1252_s2, 4  ;;  %s44_s1 = int_to_ptr.hbm [resolvable:$true] %s43_s1 }
   0x8   :  { %s19_s26 = sshll.u32 %s1050_s25, 4  ;;  %s56_s30 = sshll.u32 %s1253_s3, 4  ;;  %s20_s26 = int_to_ptr.vmem [resolvable:$true] %s19_s26  ;;  %s57_s30 = int_to_ptr.hbm [resolvable:$true] %s56_s30 }
   0x9   :  { %25 = dma.hbm_to_vmem [thread:$0]  %s18_s22, 256, %s20_s26, [#allocation3], %s1048_s23, %s1048_s23, %s1049_s24  }
   0xa   :  { %s1051_s5 = smov [#allocation7]   ;;  %s1052_s7 = smov [#allocation8]  }
   0xb   :  { %s45_s6 = sshll.u32 %s1051_s5, 4  ;;  %s58_s2 = sshll.u32 %s1052_s7, 4  ;;  %s46_s6 = int_to_ptr.vmem [resolvable:$true] %s45_s6  ;;  %s59_s2 = int_to_ptr.vmem [resolvable:$true] %s58_s2 }
   0xc   :  { %51 = dma.hbm_to_vmem [thread:$0]  %s44_s1, 512, %s46_s6, [#allocation6], %s1048_s23, %s1048_s23, %s1049_s24  }
   0xd   :  { %64 = dma.hbm_to_vmem [thread:$0]  %s57_s30, 512, %s59_s2, [#allocation9], %s1048_s23, %s1048_s23, %s1049_s24  }
   0xe   :  { %1039 = dma.done.wait [#allocation3], 256  }
   0xf   :  { %1040 = vsyncadd [#allocation3], 4294967040 }
  0x10   :  { %1041 = dma.done.wait [#allocation6], 768  }
  0x11   :  { %1042 = vsyncadd [#allocation6], 4294966528 }
  0x12   :  { %1043 = dma.done.wait [#allocation9], 512  }
  0x13   :  { %1044 = vsyncadd [#allocation9], 4294966784  ;;  %v86_v0 = vld [vmem:[#allocation7 + $0x18] sm:$0xff]  ;;  %v85_v1 = vld [vmem:[#allocation7 + $0x10] sm:$0xff]  ;;  %vm93_vm0 = vcmask 261120   ;;  %s1053_s3 = smov 120  }
  0x14   :  { %112 = vmatpush.msra.mxu0 %v86_v0  ;;  %v84_v2 = vld [vmem:[#allocation7 + $0x8] sm:$0xff]  ;;  %v83_v3 = vld [vmem:[#allocation7] sm:$0xff]  ;;  %s1054_s8 = smov 88   ;;  %s1055_s9 = smov 96   ;;  %v1126_v8 = vld [vmem:[#allocation5 + $0x8] sm:$0xff]  ;;  %vm149_vm1 = vcmask 64512  }
  0x15   :  { %v81_v4 = vld [vmem:[#allocation2] sm:$0xff]  ;;  %v82_v5 = vld [vmem:[#allocation2 + $0x8] sm:$0xff]  ;;  %s1056_s10 = smov 80   ;;  %s1057_s11 = smov 72   ;;  %v90_v9 = vld [vmem:[#allocation8 + $0x18] sm:$0xff] }
  0x16   :  { %113 = vmatpush.msra.mxu0 %v85_v1  ;;  %v1133_v10 = vld [vmem:[#allocation5] sm:$0xff]  ;;  %135 = vmatpush.msra.mxu1 %v90_v9  ;;  %v88_v13 = vld [vmem:[#allocation8 + $0x8] sm:$0xff]  ;;  %v87_v14 = vld [vmem:[#allocation8] sm:$0xff]  ;;  %s1058_s12 = smov 112   ;;  %s1059_s13 = smov 104  }
  0x17   :  { %v89_v11 = vld [vmem:[#allocation8 + $0x10] sm:$0xff]  ;;  %s1060_s14 = smov 64   ;;  %s1061_s15 = smov 32  }
  0x18   :  { %114 = vmatpush.msra.mxu0 %v84_v2  ;;  %136 = vmatpush.msra.mxu1 %v89_v11  ;;  %s1062_s16 = smov [#allocation10]   ;;  %s813_s20 = sshll.u32 %s1254_s4, 4  ;;  %s814_s20 = int_to_ptr.hbm [resolvable:$true] %s813_s20 }
  0x19   :  { %s811_s17 = sshll.u32 %s1062_s16, 4  ;;  %s812_s17 = int_to_ptr.vmem [resolvable:$true] %s811_s17 }
  0x1a   :  { %115 = vmatpush.msra.mxu0 %v83_v3  ;;  %137 = vmatpush.msra.mxu1 %v88_v13 }
  0x1b   :  { %828 = vmatmul.msk.f32.vlgmr.msra.gmra.mxu0 %vm93_vm0, %v81_v4 }
  0x1c   :  { %138 = vmatpush.msra.mxu1 %v87_v14 }
  0x1d   :  { %830 = vmatmul.msk.f32.vlgmr.msra.gmra.mxu1 %vm93_vm0, %v81_v4 }
  0x23   :  { %829 = vmatmul.msk.f32.gmra.mxu0 %vm93_vm0, %v82_v5 }
  0x25   :  { %831 = vmatmul.msk.f32.gmra.mxu1 %vm93_vm0, %v82_v5 }
  0x98   :  { %v1114_v6 = vpop.f32.mrf.mxu0 }
  0x99   :  { %253 = vrot.lane.b32.xlu2 %v1114_v6, %s1053_s3  ;;  %255 = vrot.lane.b32.xlu1 %v1114_v6, %s1054_s8 }
  0x9a   :  { %147 = vrot.lane.b32.xlu0 %v1114_v6, %s1055_s9  ;;  %v140_v20 = vpop.f32.mrf.mxu1 }
  0x9b   :  { %441 = vmatpush.msrb.mxu0 %v140_v20 }
  0xa0   :  { %v1120_v7 = vpop.f32.mrf.mxu0 }
  0xa1   :  { %283 = vrot.lane.b32.xlu1 %v1120_v7, %s1054_s8  ;;  %281 = vrot.lane.b32.xlu2 %v1120_v7, %s1053_s3 }
  0xa2   :  { %175 = vrot.lane.b32.xlu0 %v1120_v7, %s1055_s9  ;;  %v143_v22 = vpop.f32.mrf.mxu1 }
  0xa3   :  { %464 = vmatpush.msrb.mxu1 %v143_v22  ;;  %v1150_v34 = vpack.i.bf16 %v143_v22, %v140_v20 }
  0xa9   :  { %315 = vrot.lane.b32.xlu1 %v1126_v8, %s1053_s3 }
  0xaa   :  { %313 = vrot.lane.b32.xlu0 %v1133_v10, %s1053_s3 }
  0xb1   :  { %499 = vrot.lane.b32.xlu1 %v1120_v7, %s1056_s10 }
  0xb9   :  { %639 = vrot.lane.b32.xlu1 %v1114_v6, %s1057_s11 }
  0xf3   :  { %v254_v18 = vpop.permute.xlu2 %253 }
  0xfb   :  { %v282_v19 = vpop.permute.xlu2 %281 }
 0x10b   :  { %v256_v12 = vpop.permute.xlu1 %255 }
 0x10c   :  { %v148_v15 = vpop.permute.xlu0 %147 }
 0x10d   :  { %832 = vmatpush.xpose.msk.msra.mxu2 %vm149_vm1, %v148_v15 }
 0x110   :  { %833 = vmatmul.msk.f32.vlgmr.msra.gmra.mxu2 %vm149_vm1, %v1114_v6 }
 0x111   :  { %836 = vmatpush.xpose.msk.msrb.mxu2 %vm149_vm1, %v256_v12 }
 0x113   :  { %v284_v16 = vpop.permute.xlu1 %283 }
 0x114   :  { %v176_v17 = vpop.permute.xlu0 %175 }
 0x115   :  { %834 = vmatpush.xpose.msk.msra.mxu3 %vm149_vm1, %v176_v17 }
 0x118   :  { %835 = vmatmul.msk.f32.vlgmr.msra.gmra.mxu3 %vm149_vm1, %v1120_v7  ;;  %837 = vmatmul.msk.f32.vlgmr.msrb.gmra.mxu2 %vm149_vm1, %v254_v18 }
 0x119   :  { %838 = vmatpush.xpose.msk.msrb.mxu3 %vm149_vm1, %v284_v16 }
 0x11b   :  { %v316_v31 = vpop.permute.xlu1 %315 }
 0x11c   :  { %v314_v23 = vpop.permute.xlu0 %313 }
 0x120   :  { %839 = vmatmul.msk.f32.vlgmr.msrb.gmra.mxu3 %vm149_vm1, %v282_v19 }
 0x123   :  { %v500_v44 = vpop.permute.xlu1 %499 }
 0x12b   :  { %v640_v56 = vpop.permute.xlu1 %639 }
 0x193   :  { %v171_v21 = vpop.f32.mrf.mxu2 }
 0x194   :  { %v201_v52 = vmul.f32 0.35355338, %v171_v21 }
 0x196   :  { %v1180_v54 = vadd.f32 %v201_v52, %v1133_v10 }
 0x198   :  { %v205_v55 = vsel %vm149_vm1, %v1180_v54, -inf }
 0x19b   :  { %v198_v24 = vpop.f32.mrf.mxu3  ;;  %v278_v25 = vpop.f32.mrf.mxu2 }
 0x19c   :  { %v309_v26 = vmul.f32 0.35355338, %v278_v25  ;;  %v202_v50 = vmul.f32 0.35355338, %v198_v24 }
 0x19e   :  { %v319_v27 = vadd.f32 %v314_v23, %v309_v26  ;;  %v1175_v51 = vadd.f32 %v202_v50, %v1126_v8 }
 0x1a0   :  { %v321_v28 = vsel %vm149_vm1, %v319_v27, -inf  ;;  %v208_v53 = vsel %vm149_vm1, %v1175_v51, -inf }
 0x1a1   :  { %322 = vmax.xlane.f32.xlu2 %v321_v28 }
 0x1a3   :  { %v306_v29 = vpop.f32.mrf.mxu3 }
 0x1a4   :  { %v310_v30 = vmul.f32 0.35355338, %v306_v29 }
 0x1a6   :  { %v320_v32 = vadd.f32 %v316_v31, %v310_v30 }
 0x1a8   :  { %v324_v33 = vsel %vm149_vm1, %v320_v32, -inf }
 0x1a9   :  { %325 = vmax.xlane.f32.xlu0 %v324_v33 }
 0x1b9   :  { %873 = vrot.lane.b32.xlu2 %v1150_v34, %s1055_s9 }
 0x1bd   :  { %471 = vrot.lane.b32.xlu0 %v1114_v6, %s1056_s10 }
 0x1c1   :  { %497 = vrot.lane.b32.xlu2 %v1120_v7, %s1058_s12 }
 0x1c5   :  { %469 = vrot.lane.b32.xlu0 %v1114_v6, %s1058_s12 }
 0x1cd   :  { %667 = vrot.lane.b32.xlu0 %v1120_v7, %s1057_s11 }
 0x1d5   :  { %527 = vrot.lane.b32.xlu0 %v1133_v10, %s1058_s12 }
 0x1dd   :  { %697 = vrot.lane.b32.xlu0 %v1126_v8, %s1059_s13 }
 0x214   :  { %v323_v35 = vpop.xlane.xlu2 %322 }
 0x215   :  { %v327_v36 = vsub.f32 %v319_v27, %v323_v35 }
 0x217   :  { %v329_v37 = vmul.f32 1.442695, %v327_v36 }
 0x219   :  { %887 = vpow2.f32 %v329_v37 }
 0x21c   :  { %v874_v38 = vpop.permute.xlu2 %873  ;;  %v326_v39 = vpop.xlane.xlu0 %325 }
 0x21d   :  { %v876_v40 = vunpack.i.h.bf16 %v874_v38  ;;  %v875_v41 = vunpack.i.l.bf16 %v874_v38  ;;  %v328_v42 = vsub.f32 %v320_v32, %v326_v39 }
 0x21f   :  { %v888_v43 = vpop.eup %887  ;;  %v331_v45 = vmul.f32 1.442695, %v328_v42  ;;  %418 = vmatpush.msra.mxu3 %v876_v40  ;;  %391 = vmatpush.msra.mxu2 %v875_v41 }
 0x220   :  { %v333_v46 = vsel %vm149_vm1, %v888_v43, 0.0 }
 0x221   :  { %846 = vmatpush.xpose.msk.msrb.mxu3 %vm149_vm1, %v500_v44  ;;  %889 = vpow2.f32 %v331_v45  ;;  %334 = vadd.xlane.f32.xlu1 %v333_v46 }
 0x224   :  { %v498_v57 = vpop.permute.xlu2 %497 }
 0x227   :  { %v890_v47 = vpop.eup %889 }
 0x228   :  { %v336_v48 = vsel %vm149_vm1, %v890_v47, 0.0 }
 0x229   :  { %337 = vadd.xlane.f32.xlu2 %v336_v48 }
 0x22f   :  { %v472_v49 = vpop.permute.xlu0 %471 }
 0x230   :  { %844 = vmatpush.xpose.msk.msrb.mxu2 %vm149_vm1, %v472_v49 }
 0x23a   :  { %665 = vrot.lane.b32.xlu1 %v1120_v7, %s1059_s13 }
 0x241   :  { %637 = vrot.lane.b32.xlu2 %v1114_v6, %s1059_s13 }
 0x242   :  { %695 = vrot.lane.b32.xlu1 %v1133_v10, %s1059_s13 }
 0x249   :  { %529 = vrot.lane.b32.xlu2 %v1126_v8, %s1058_s12  ;;  %v470_v8 = vpop.permute.xlu0 %469 }
 0x251   :  { %v668_v19 = vpop.permute.xlu0 %667 }
 0x259   :  { %v528_v26 = vpop.permute.xlu0 %527 }
 0x26c   :  { %209 = vmax.xlane.f32.xlu1 %v208_v53 }
 0x272   :  { %206 = vmax.xlane.f32.xlu2 %v205_v55 }
 0x294   :  { %v335_v58 = vpop.xlane.xlu1 %334 }
 0x295   :  { %891 = vrcp.f32 %v335_v58  ;;  %v350_v63 = vand.u32 2147483648, %v335_v58  ;;  %v348_v1 = vand.u32 2147483647, %v335_v58  ;;  %vm344_vm3 = vweird.f32 %v335_v58 }
 0x297   :  { %v351_v4 = vor.u32 1.1754944e-38, %v350_v63  ;;  %vm349_vm5 = vcmp.eq.f32.partialorder %v348_v1, 8.507059e+37 }
 0x29b   :  { %v892_v59 = vpop.eup %891 }
 0x29c   :  { %v340_v60 = vmul.f32 %v892_v59, %v335_v58  ;;  %v338_v61 = vpop.xlane.xlu2 %337  ;;  %vm345_vm2 = vweird.f32 %v892_v59 }
 0x29d   :  { %893 = vrcp.f32 %v338_v61  ;;  %vm346_vm4 = vmor %vm344_vm3, %vm345_vm2  ;;  %v364_v11 = vand.u32 2147483648, %v338_v61  ;;  %v362_v13 = vand.u32 2147483647, %v338_v61  ;;  %vm358_vm7 = vweird.f32 %v338_v61 }
 0x29e   :  { %v341_v62 = vsub.f32 1.0, %v340_v60 }
 0x29f   :  { %v365_v15 = vor.u32 1.1754944e-38, %v364_v11  ;;  %vm363_vm9 = vcmp.eq.f32.partialorder %v362_v13, 8.507059e+37 }
 0x2a0   :  { %v342_v0 = vmul.f32 %v892_v59, %v341_v62 }
 0x2a2   :  { %v343_v2 = vadd.f32 %v892_v59, %v342_v0 }
 0x2a3   :  { %v894_v3 = vpop.eup %893 }
 0x2a4   :  { %v347_v5 = vsel %vm346_vm4, %v892_v59, %v343_v2  ;;  %v354_v6 = vmul.f32 %v894_v3, %v338_v61  ;;  %vm359_vm6 = vweird.f32 %v894_v3  ;;  %v638_v20 = vpop.permute.xlu2 %637 }
 0x2a5   :  { %v352_v7 = vsel %vm349_vm5, %v351_v4, %v347_v5  ;;  %vm360_vm8 = vmor %vm358_vm7, %vm359_vm6 }
 0x2a6   :  { %v355_v9 = vsub.f32 1.0, %v354_v6  ;;  %v367_v10 = vmul.f32 %v888_v43, %v352_v7 }
 0x2a8   :  { %v356_v12 = vmul.f32 %v894_v3, %v355_v9  ;;  %840 = vmatmul.msk.f32.vlgmr.msra.gmra.mxu2 %vm149_vm1, %v367_v10 }
 0x2a9   :  { %850 = vmatpush.xpose.msk.msra.mxu2 %vm149_vm1, %v640_v56 }
 0x2aa   :  { %v357_v14 = vadd.f32 %v894_v3, %v356_v12 }
 0x2ac   :  { %v361_v16 = vsel %vm360_vm8, %v894_v3, %v357_v14  ;;  %v666_v21 = vpop.permute.xlu1 %665  ;;  %v530_v23 = vpop.permute.xlu2 %529 }
 0x2ad   :  { %v366_v17 = vsel %vm363_vm9, %v365_v15, %v361_v16 }
 0x2ae   :  { %v368_v18 = vmul.f32 %v890_v47, %v366_v17  ;;  %v698_v47 = vpop.permute.xlu0 %697 }
 0x2b0   :  { %841 = vmatmul.msk.f32.vlgmr.msra.gmra.mxu3 %vm149_vm1, %v368_v18  ;;  %845 = vmatmul.msk.f32.vlgmr.msrb.gmra.mxu2 %vm149_vm1, %v470_v8 }
 0x2b1   :  { %852 = vmatpush.xpose.msk.msra.mxu3 %vm149_vm1, %v668_v19 }
 0x2b4   :  { %v696_v22 = vpop.permute.xlu1 %695 }
 0x2b8   :  { %847 = vmatmul.msk.f32.vlgmr.msrb.gmra.mxu3 %vm149_vm1, %v498_v57  ;;  %851 = vmatmul.msk.f32.vlgmr.msra.gmra.mxu2 %vm149_vm1, %v638_v20 }
 0x2c0   :  { %853 = vmatmul.msk.f32.vlgmr.msra.gmra.mxu3 %vm149_vm1, %v666_v21 }
 0x2df   :  { %v210_v25 = vpop.xlane.xlu1 %209 }
 0x2e0   :  { %v212_v31 = vsub.f32 %v1175_v51, %v210_v25 }
 0x2e2   :  { %v215_v36 = vmul.f32 1.442695, %v212_v31 }
 0x2e4   :  { %895 = vpow2.f32 %v215_v36 }
 0x2e5   :  { %v207_v29 = vpop.xlane.xlu2 %206 }
 0x2e6   :  { %v211_v33 = vsub.f32 %v1180_v54, %v207_v29 }
 0x2e8   :  { %v213_v37 = vmul.f32 1.442695, %v211_v33 }
 0x2ea   :  { %897 = vpow2.f32 %v213_v37  ;;  %v1201_v48 = vpop.eup %895 }
 0x2eb   :  { %v220_v53 = vsel %vm149_vm1, %v1201_v48, 0.0 }
 0x2f0   :  { %v1203_v50 = vpop.eup %897 }
 0x2f1   :  { %v217_v52 = vsel %vm149_vm1, %v1203_v50, 0.0 }
 0x32b   :  { %v1192_v24 = vpop.f32.mrf.mxu2 }
 0x333   :  { %v1194_v27 = vpop.f32.mrf.mxu3  ;;  %v494_v28 = vpop.f32.mrf.mxu2 }
 0x334   :  { %v525_v30 = vmul.f32 0.35355338, %v494_v28 }
 0x336   :  { %v533_v32 = vadd.f32 %v528_v26, %v525_v30 }
 0x338   :  { %v535_v35 = vsel %vm149_vm1, %v533_v32, -inf }
 0x339   :  { %536 = vmax.xlane.f32.xlu0 %v535_v35 }
 0x33b   :  { %v522_v38 = vpop.f32.mrf.mxu3  ;;  %v662_v39 = vpop.f32.mrf.mxu2 }
 0x33c   :  { %v526_v40 = vmul.f32 0.35355338, %v522_v38  ;;  %v693_v41 = vmul.f32 0.35355338, %v662_v39 }
 0x33e   :  { %v701_v42 = vadd.f32 %v696_v22, %v693_v41  ;;  %v534_v43 = vadd.f32 %v530_v23, %v526_v40 }
 0x340   :  { %v538_v44 = vsel %vm149_vm1, %v534_v43, -inf  ;;  %v703_v45 = vsel %vm149_vm1, %v701_v42, -inf }
 0x341   :  { %539 = vmax.xlane.f32.xlu2 %v538_v44  ;;  %704 = vmax.xlane.f32.xlu1 %v703_v45 }
 0x343   :  { %v690_v46 = vpop.f32.mrf.mxu3 }
 0x344   :  { %v694_v49 = vmul.f32 0.35355338, %v690_v46 }
 0x346   :  { %v702_v51 = vadd.f32 %v698_v47, %v694_v49 }
 0x348   :  { %v706_v54 = vsel %vm149_vm1, %v702_v51, -inf }
 0x349   :  { %218 = vadd.xlane.f32.xlu2 %v217_v52  ;;  %221 = vadd.xlane.f32.xlu1 %v220_v53 }
 0x34a   :  { %707 = vmax.xlane.f32.xlu0 %v706_v54 }
 0x3ac   :  { %v537_v55 = vpop.xlane.xlu0 %536 }
 0x3ad   :  { %v541_v56 = vsub.f32 %v533_v32, %v537_v55 }
 0x3af   :  { %v543_v57 = vmul.f32 1.442695, %v541_v56 }
 0x3b1   :  { %899 = vpow2.f32 %v543_v57 }
 0x3b4   :  { %v540_v58 = vpop.xlane.xlu2 %539  ;;  %v705_v59 = vpop.xlane.xlu1 %704 }
 0x3b5   :  { %v542_v60 = vsub.f32 %v534_v43, %v540_v58  ;;  %v709_v61 = vsub.f32 %v701_v42, %v705_v59 }
 0x3b7   :  { %v1210_v62 = vpop.eup %899  ;;  %v545_v63 = vmul.f32 1.442695, %v542_v60  ;;  %v711_v0 = vmul.f32 1.442695, %v709_v61 }
 0x3b8   :  { %v547_v1 = vsel %vm149_vm1, %v1210_v62, 0.0 }
 0x3b9   :  { %901 = vpow2.f32 %v545_v63  ;;  %548 = vadd.xlane.f32.xlu0 %v547_v1 }
 0x3ba   :  { %903 = vpow2.f32 %v711_v0 }
 0x3bc   :  { %v219_v2 = vpop.xlane.xlu2 %218  ;;  %v222_v3 = vpop.xlane.xlu1 %221 }
 0x3bd   :  { %905 = vrcp.f32 %v219_v2  ;;  %v708_v4 = vpop.xlane.xlu0 %707  ;;  %v234_v16 = vand.u32 2147483648, %v219_v2  ;;  %v232_v19 = vand.u32 2147483647, %v219_v2  ;;  %v248_v20 = vand.u32 2147483648, %v222_v3 }
 0x3be   :  { %907 = vrcp.f32 %v222_v3  ;;  %v710_v6 = vsub.f32 %v702_v51, %v708_v4  ;;  %v246_v23 = vand.u32 2147483647, %v222_v3  ;;  %vm228_vm12 = vweird.f32 %v219_v2 }
 0x3bf   :  { %v1214_v5 = vpop.eup %901  ;;  %v235_v28 = vor.u32 1.1754944e-38, %v234_v16  ;;  %vm242_vm14 = vweird.f32 %v222_v3  ;;  %vm233_vm15 = vcmp.eq.f32.partialorder %v232_v19, 8.507059e+37  ;;  %v249_v30 = vor.u32 1.1754944e-38, %v248_v20 }
 0x3c0   :  { %v1216_v7 = vpop.eup %903  ;;  %v550_v8 = vsel %vm149_vm1, %v1214_v5, 0.0  ;;  %v713_v9 = vmul.f32 1.442695, %v710_v6  ;;  %vm247_vm3 = vcmp.eq.f32.partialorder %v246_v23, 8.507059e+37 }
 0x3c1   :  { %551 = vadd.xlane.f32.xlu2 %v550_v8  ;;  %v715_v10 = vsel %vm149_vm1, %v1216_v7, 0.0 }
 0x3c2   :  { %716 = vadd.xlane.f32.xlu1 %v715_v10  ;;  %909 = vpow2.f32 %v713_v9 }
 0x3c3   :  { %v906_v11 = vpop.eup %905 }
 0x3c4   :  { %v908_v12 = vpop.eup %907  ;;  %v224_v13 = vmul.f32 %v906_v11, %v219_v2  ;;  %vm229_vm10 = vweird.f32 %v906_v11 }
 0x3c5   :  { %v238_v14 = vmul.f32 %v908_v12, %v222_v3  ;;  %vm243_vm11 = vweird.f32 %v908_v12  ;;  %vm230_vm13 = vmor %vm228_vm12, %vm229_vm10 }
 0x3c6   :  { %v225_v15 = vsub.f32 1.0, %v224_v13  ;;  %vm244_vm2 = vmor %vm242_vm14, %vm243_vm11 }
 0x3c7   :  { %v239_v17 = vsub.f32 1.0, %v238_v14 }
 0x3c8   :  { %v226_v18 = vmul.f32 %v906_v11, %v225_v15  ;;  %v1222_v21 = vpop.eup %909 }
 0x3c9   :  { %v240_v22 = vmul.f32 %v908_v12, %v239_v17  ;;  %v718_v26 = vsel %vm149_vm1, %v1222_v21, 0.0 }
 0x3ca   :  { %v227_v25 = vadd.f32 %v906_v11, %v226_v18  ;;  %719 = vadd.xlane.f32.xlu0 %v718_v26 }
 0x3cb   :  { %v241_v29 = vadd.f32 %v908_v12, %v240_v22 }
 0x3cc   :  { %v231_v31 = vsel %vm230_vm13, %v906_v11, %v227_v25 }
 0x3cd   :  { %v236_v32 = vsel %vm233_vm15, %v235_v28, %v231_v31  ;;  %v245_v33 = vsel %vm244_vm2, %v908_v12, %v241_v29 }
 0x3ce   :  { %v251_v35 = vmul.f32 %v1203_v50, %v236_v32  ;;  %v250_v36 = vsel %vm247_vm3, %v249_v30, %v245_v33 }
 0x3cf   :  { %v252_v37 = vmul.f32 %v1201_v48, %v250_v36 }
 0x3d0   :  { %842 = vmatmul.msk.f32.vlgmr.msrb.gmra.mxu0 %vm149_vm1, %v251_v35 }
 0x3d1   :  { %843 = vmatmul.msk.f32.vlgmr.msrb.gmra.mxu1 %vm149_vm1, %v252_v37 }
 0x3d9   :  { %878 = vrot.lane.b32.xlu2 %v1150_v34, %s1060_s14 }
 0x3db   :  { %883 = vrot.lane.b32.xlu1 %v1150_v34, %s1061_s15 }
 0x42c   :  { %v549_v38 = vpop.xlane.xlu0 %548 }
 0x42d   :  { %911 = vrcp.f32 %v549_v38  ;;  %v564_v44 = vand.u32 2147483648, %v549_v38  ;;  %v562_v46 = vand.u32 2147483647, %v549_v38  ;;  %vm558_vm5 = vweird.f32 %v549_v38 }
 0x42f   :  { %v565_v49 = vor.u32 1.1754944e-38, %v564_v44  ;;  %vm563_vm7 = vcmp.eq.f32.partialorder %v562_v46, 8.507059e+37 }
 0x433   :  { %v912_v39 = vpop.eup %911 }
 0x434   :  { %v554_v40 = vmul.f32 %v912_v39, %v549_v38  ;;  %v552_v41 = vpop.xlane.xlu2 %551  ;;  %vm559_vm4 = vweird.f32 %v912_v39 }
 0x435   :  { %913 = vrcp.f32 %v552_v41  ;;  %v717_v42 = vpop.xlane.xlu1 %716  ;;  %vm560_vm6 = vmor %vm558_vm5, %vm559_vm4  ;;  %v578_v60 = vand.u32 2147483648, %v552_v41  ;;  %v576_v0 = vand.u32 2147483647, %v552_v41  ;;  %vm572_vm9 = vweird.f32 %v552_v41 }
 0x436   :  { %v555_v43 = vsub.f32 1.0, %v554_v40  ;;  %915 = vrcp.f32 %v717_v42  ;;  %v732_v9 = vand.u32 2147483648, %v717_v42  ;;  %vm726_vm13 = vweird.f32 %v717_v42 }
 0x437   :  { %v579_v3 = vor.u32 1.1754944e-38, %v578_v60  ;;  %vm577_vm11 = vcmp.eq.f32.partialorder %v576_v0, 8.507059e+37  ;;  %v730_v12 = vand.u32 2147483647, %v717_v42 }
 0x438   :  { %v556_v45 = vmul.f32 %v912_v39, %v555_v43  ;;  %v733_v16 = vor.u32 1.1754944e-38, %v732_v9 }
 0x439   :  { %vm731_vm2 = vcmp.eq.f32.partialorder %v730_v12, 8.507059e+37 }
 0x43a   :  { %v557_v47 = vadd.f32 %v912_v39, %v556_v45 }
 0x43b   :  { %v914_v48 = vpop.eup %913 }
 0x43c   :  { %v916_v50 = vpop.eup %915  ;;  %v561_v34 = vsel %vm560_vm6, %v912_v39, %v557_v47  ;;  %v568_v51 = vmul.f32 %v914_v48, %v552_v41  ;;  %v879_v52 = vpop.permute.xlu2 %878  ;;  %vm573_vm8 = vweird.f32 %v914_v48 }
 0x43d   :  { %v566_v53 = vsel %vm563_vm7, %v565_v49, %v561_v34  ;;  %v722_v54 = vmul.f32 %v916_v50, %v717_v42  ;;  %v881_v55 = vunpack.i.h.bf16 %v879_v52  ;;  %v880_v57 = vunpack.i.l.bf16 %v879_v52  ;;  %v720_v58 = vpop.xlane.xlu0 %719  ;;  %vm574_vm10 = vmor %vm572_vm9, %vm573_vm8 }
 0x43e   :  { %v569_v56 = vsub.f32 1.0, %v568_v51  ;;  %v581_v59 = vmul.f32 %v1210_v62, %v566_v53  ;;  %917 = vrcp.f32 %v720_v58  ;;  %vm727_vm12 = vweird.f32 %v916_v50 }
 0x43f   :  { %v723_v61 = vsub.f32 1.0, %v722_v54  ;;  %630 = vmatpush.msra.mxu1 %v881_v55  ;;  %604 = vmatpush.msra.mxu0 %v880_v57  ;;  %vm728_vm14 = vmor %vm726_vm13, %vm727_vm12  ;;  %v746_v15 = vand.u32 2147483648, %v720_v58  ;;  %v744_v18 = vand.u32 2147483647, %v720_v58  ;;  %vm740_vm3 = vweird.f32 %v720_v58 }
 0x440   :  { %v570_v63 = vmul.f32 %v914_v48, %v569_v56  ;;  %848 = vmatmul.msk.f32.vlgmr.msra.gmra.mxu0 %vm149_vm1, %v581_v59 }
 0x441   :  { %v724_v1 = vmul.f32 %v916_v50, %v723_v61  ;;  %v747_v22 = vor.u32 1.1754944e-38, %v746_v15  ;;  %vm745_vm5 = vcmp.eq.f32.partialorder %v744_v18, 8.507059e+37 }
 0x442   :  { %v571_v2 = vadd.f32 %v914_v48, %v570_v63 }
 0x443   :  { %v725_v62 = vadd.f32 %v916_v50, %v724_v1 }
 0x444   :  { %v575_v4 = vsel %vm574_vm10, %v914_v48, %v571_v2  ;;  %v918_v6 = vpop.eup %917 }
 0x445   :  { %v580_v8 = vsel %vm577_vm11, %v579_v3, %v575_v4  ;;  %v736_v10 = vmul.f32 %v918_v6, %v720_v58  ;;  %v729_v14 = vsel %vm728_vm14, %v916_v50, %v725_v62  ;;  %vm741_vm15 = vweird.f32 %v918_v6 }
 0x446   :  { %v582_v11 = vmul.f32 %v1214_v5, %v580_v8  ;;  %v734_v19 = vsel %vm731_vm2, %v733_v16, %v729_v14  ;;  %vm742_vm4 = vmor %vm740_vm3, %vm741_vm15 }
 0x447   :  { %v737_v13 = vsub.f32 1.0, %v736_v10  ;;  %v749_v29 = vmul.f32 %v1216_v7, %v734_v19 }
 0x448   :  { %849 = vmatmul.msk.f32.vlgmr.msra.gmra.mxu1 %vm149_vm1, %v582_v11 }
 0x449   :  { %v738_v17 = vmul.f32 %v918_v6, %v737_v13 }
 0x44b   :  { %v739_v20 = vadd.f32 %v918_v6, %v738_v17 }
 0x44d   :  { %v884_v23 = vpop.permute.xlu1 %883  ;;  %v743_v5 = vsel %vm742_vm4, %v918_v6, %v739_v20  ;;  %v443_v32 = vpop.f32.mrf.mxu0 }
 0x44e   :  { %v886_v25 = vunpack.i.h.bf16 %v884_v23  ;;  %v885_v26 = vunpack.i.l.bf16 %v884_v23  ;;  %v748_v28 = vsel %vm745_vm5, %v747_v22, %v743_v5  ;;  %v466_v31 = vpop.f32.mrf.mxu1  ;;  %v444_v36 = vadd.f32 %v443_v32, %v1192_v24 }
 0x44f   :  { %v750_v30 = vmul.f32 %v1222_v21, %v748_v28  ;;  %v467_v37 = vadd.f32 %v466_v31, %v1194_v27 }
 0x450   :  { %772 = vmatpush.msrb.mxu0 %v885_v26  ;;  %798 = vmatpush.msrb.mxu1 %v886_v25 }
 0x451   :  { %854 = vmatmul.msk.f32.vlgmr.msrb.gmra.mxu0 %vm149_vm1, %v749_v29  ;;  %855 = vmatmul.msk.f32.vlgmr.msrb.gmra.mxu1 %vm149_vm1, %v750_v30 }
 0x4bd   :  { %v606_v35 = vpop.f32.mrf.mxu0 }
 0x4be   :  { %v635_v38 = vadd.f32 %v606_v35, %v444_v36 }
 0x4c5   :  { %v632_v33 = vpop.f32.mrf.mxu1 }
 0x4c6   :  { %v636_v7 = vadd.f32 %v632_v33, %v467_v37 }
 0x4ce   :  { %v774_v21 = vpop.f32.mrf.mxu0  ;;  %v800_v40 = vpop.f32.mrf.mxu1 }
 0x4cf   :  { %v803_v39 = vadd.f32 %v774_v21, %v635_v38  ;;  %v804_v41 = vadd.f32 %v800_v40, %v636_v7 }
 0x4d1   :  { %805 = vst.msk [vmem:[#allocation10] sm:$0xff] %vm93_vm0, %v803_v39 }
 0x4d2   :  { %806 = vst.msk [vmem:[#allocation10 + $0x8] sm:$0xff] %vm93_vm0, %v804_v41 }
 0x4d3   :  { %819 = dma.vmem_to_hbm [thread:$0]  %s812_s17, 256, %s814_s20, [#allocation4], %s1048_s23, %s1048_s23, %s1049_s24  }
 0x4d4   :  { %1045 = dma.done.wait [#allocation4], 256  }
 0x4d5   :  { %1046 = vsyncadd [#allocation4], 4294967040 }
 0x4d6   :  { %824 = vsyncpa [#allocation3], 1 }
 0x4d7   :  { %825 = vsyncpa [#allocation6], 1 }
 0x4d8   :  { %826 = vsyncpa [#allocation9], 1 }
 0x4d9   :  { %827 = vsyncpa [#allocation4], 1 }

</bundles_post_ra>
